<compile_context>
chip_gen: v7x
topology: tpu7x:2x2x1
jax: 0.10.0
libtpu: 0.0.40
codegen_flags: <defaults>
</compile_context>

<pallas_src>
import jax
import jax.numpy as jnp
from jax.experimental import pallas as pl
from jax.experimental.pallas import tpu as pltpu


def subnet_kernel(x_ref, scale_ref, shift_ref,
                  w1_ref, b1_ref, w2_ref, b2_ref, w3_ref, b3_ref,
                  o_ref):
    # ---- folded BatchNorm1d: scale = gamma*rsqrt(var+eps), shift = beta - mean*scale
    # (statistics computed over the full batch in the wrapper; f32 elementwise) ----
    normed = x_ref[...] * scale_ref[...] + shift_ref[...]          # (TB, in_p) f32

    # ---- Dropout: identity (eval / deterministic) ----

    mm_dtype = w1_ref.dtype                                        # bf16 into the MXU

    # ---- linear_1 + ReLU ----
    y1 = jnp.dot(normed.astype(mm_dtype), w1_ref[...],
                 preferred_element_type=jnp.float32)
    y1 = jnp.maximum(y1 + b1_ref[...], 0.0)

    # ---- linear_2 + ReLU ----
    y2 = jnp.dot(y1.astype(mm_dtype), w2_ref[...],
                 preferred_element_type=jnp.float32)
    y2 = jnp.maximum(y2 + b2_ref[...], 0.0)

    # ---- linear_3 + ReLU ----
    y3 = jnp.dot(y2.astype(mm_dtype), w3_ref[...],
                 preferred_element_type=jnp.float32)
    y3 = jnp.maximum(y3 + b3_ref[...], 0.0)

    o_ref[...] = y3.astype(o_ref.dtype)


def _round_up(n, m):
    return ((n + m - 1) // m) * m


def subnet_forward(x, gamma, beta, w1, b1, w2, b2, w3, b3,
                   *, eps=1e-5, batch_tile=512, matmul_dtype=jnp.bfloat16):
    """x: (batch, in_size) f32. Weights wi given as (in, out); biases (1, out)."""
    batch, in_size = x.shape
    hidden = w1.shape[1]

    # ---- BatchNorm statistics over the FULL batch, folded to scale/shift ----
    x32 = x.astype(jnp.float32)
    mean = jnp.mean(x32, axis=0, keepdims=True)
    var = jnp.mean(jnp.square(x32 - mean), axis=0, keepdims=True)   # biased variance
    scale = gamma.astype(jnp.float32) * jax.lax.rsqrt(var + eps)
    shift = beta.astype(jnp.float32) - mean * scale

    # ---- pad feature dims to 128 (lane-dense) and batch to the batch tile ----
    in_p = _round_up(in_size, 128)
    hid_p = _round_up(hidden, 128)
    tb = min(batch_tile, _round_up(batch, 8))
    batch_p = _round_up(batch, tb)

    def pad2(a, rows, cols, dtype=jnp.float32):
        a = a.astype(jnp.float32)
        a = jnp.pad(a, ((0, rows - a.shape[0]), (0, cols - a.shape[1])))
        return a.astype(dtype)

    x_p = pad2(x32, batch_p, in_p)
    scale_p = pad2(scale, 1, in_p)
    shift_p = pad2(shift, 1, in_p)
    w1_p = pad2(w1, in_p, hid_p, matmul_dtype)
    w2_p = pad2(w2, hid_p, hid_p, matmul_dtype)
    w3_p = pad2(w3, hid_p, hid_p, matmul_dtype)
    b1_p = pad2(b1, 1, hid_p)
    b2_p = pad2(b2, 1, hid_p)
    b3_p = pad2(b3, 1, hid_p)

    grid = (batch_p // tb,)

    def const(shape):
        return pl.BlockSpec(shape, lambda i: (0,) * len(shape))

    # ---- VMEM budget & cost hints ----
    elt = jnp.dtype(matmul_dtype).itemsize
    resident_bytes = ((in_p * hid_p + 2 * hid_p * hid_p) * elt    # weights (bf16)
                      + (2 * in_p + 3 * hid_p) * 4)               # scale/shift/biases
    streamed_bytes = 2 * (tb * in_p * 4 + tb * hid_p * 4)         # double-buffered x/out
    live_bytes = 3 * tb * hid_p * 4                               # y1/y2/y3 live f32
    vmem_limit = int(min(max(2 * (resident_bytes + streamed_bytes + live_bytes),
                             16 * 1024 * 1024),
                         96 * 1024 * 1024))

    flops = 2 * batch_p * (in_p * hid_p + 2 * hid_p * hid_p)
    bytes_accessed = (batch_p * in_p * 4 + batch_p * hid_p * 4
                      + (in_p * hid_p + 2 * hid_p * hid_p) * elt
                      + (2 * in_p + 3 * hid_p) * 4)

    out_p = pl.pallas_call(
        subnet_kernel,
        out_shape=jax.ShapeDtypeStruct((batch_p, hid_p), jnp.float32),
        grid=grid,
        in_specs=[
            pl.BlockSpec((tb, in_p), lambda i: (i, 0)),     # x streams over batch
            const((1, in_p)), const((1, in_p)),             # scale / shift (resident)
            const((in_p, hid_p)), const((1, hid_p)),        # w1 / b1 (resident)
            const((hid_p, hid_p)), const((1, hid_p)),       # w2 / b2 (resident)
            const((hid_p, hid_p)), const((1, hid_p)),       # w3 / b3 (resident)
        ],
        out_specs=pl.BlockSpec((tb, hid_p), lambda i: (i, 0)),
        compiler_params=pltpu.CompilerParams(
            dimension_semantics=("parallel",),
            vmem_limit_bytes=vmem_limit),
        cost_estimate=pl.CostEstimate(flops=int(flops), transcendentals=0,
                                      bytes_accessed=int(bytes_accessed)),
    )(x_p, scale_p, shift_p, w1_p, b1_p, w2_p, b2_p, w3_p, b3_p)

    return out_p[:batch, :hidden]


def init_params(key, in_size, hidden_size):
    """Deterministic parameter init (xavier-normal-ish for weights)."""
    ks = jax.random.split(key, 6)

    def xavier(k, fan_in, fan_out):
        std = (2.0 / (fan_in + fan_out)) ** 0.5
        # stored as (in, out) == transposed PyTorch Linear weight
        return (std * jax.random.normal(k, (fan_in, fan_out))).astype(jnp.float32)

    gamma = jnp.ones((1, in_size), jnp.float32)
    beta = jnp.zeros((1, in_size), jnp.float32)
    w1 = xavier(ks[0], in_size, hidden_size)
    b1 = (0.01 * jax.random.normal(ks[1], (1, hidden_size))).astype(jnp.float32)
    w2 = xavier(ks[2], hidden_size, hidden_size)
    b2 = (0.01 * jax.random.normal(ks[3], (1, hidden_size))).astype(jnp.float32)
    w3 = xavier(ks[4], hidden_size, hidden_size)
    b3 = (0.01 * jax.random.normal(ks[5], (1, hidden_size))).astype(jnp.float32)
    return gamma, beta, w1, b1, w2, b2, w3, b3


if __name__ == "__main__":
    key = jax.random.PRNGKey(0)
    k_x, k_p = jax.random.split(key)

    batch, in_size, hidden_size = 8, 16, 32
    x = jax.random.normal(k_x, (batch, in_size), dtype=jnp.float32)
    params = init_params(k_p, in_size, hidden_size)

    out = subnet_forward(x, *params)
    out = jax.block_until_ready(out)
    assert out.shape == (batch, hidden_size)

    gamma, beta, w1, b1, w2, b2, w3, b3 = params
    mean = x.mean(0, keepdims=True)
    var = ((x - mean) ** 2).mean(0, keepdims=True)
    scale = gamma * jax.lax.rsqrt(var + 1e-5)
    shift = beta - mean * scale
    normed = x * scale + shift

    # Reference matching the kernel's numerics (bf16 into matmul, f32 accumulate).
    mm = lambda a, w: jnp.dot(a.astype(jnp.bfloat16), w.astype(jnp.bfloat16),
                              preferred_element_type=jnp.float32)
    y1 = jnp.maximum(mm(normed, w1) + b1, 0.0)
    y2 = jnp.maximum(mm(y1, w2) + b2, 0.0)
    ref_bf16 = jnp.maximum(mm(y2, w3) + b3, 0.0)
    assert jnp.allclose(out, ref_bf16, atol=5e-3, rtol=5e-3), "bf16-matched ref mismatch"

    # Loose sanity check against a pure-f32 reference of the module semantics.
    z1 = jnp.maximum(normed @ w1 + b1, 0.0)
    z2 = jnp.maximum(z1 @ w2 + b2, 0.0)
    ref_f32 = jnp.maximum(z2 @ w3 + b3, 0.0)
    assert jnp.allclose(out, ref_f32, atol=5e-2, rtol=5e-2), "f32 ref mismatch"

    print("KERNEL_OK")
</pallas_src>

<mosaic_0001>
module attributes {stable_mosaic.version = 11 : i64} {
  func.func @subnet_kernel(%arg0: i32, %arg1: memref<8x128xf32, #tpu.memory_space<vmem>>, %arg2: memref<1x128xf32, #tpu.memory_space<vmem>>, %arg3: memref<1x128xf32, #tpu.memory_space<vmem>>, %arg4: memref<128x128xbf16, #tpu.memory_space<vmem>>, %arg5: memref<1x128xf32, #tpu.memory_space<vmem>>, %arg6: memref<128x128xbf16, #tpu.memory_space<vmem>>, %arg7: memref<1x128xf32, #tpu.memory_space<vmem>>, %arg8: memref<128x128xbf16, #tpu.memory_space<vmem>>, %arg9: memref<1x128xf32, #tpu.memory_space<vmem>>, %arg10: memref<8x128xf32, #tpu.memory_space<vmem>>) attributes {dimension_semantics = [#tpu.dimension_semantics<parallel>], iteration_bounds = array<i64: 1>, scalar_prefetch = 0 : i64, scratch_operands = 0 : i64, tpu.core_type = #tpu.core_type<tc>, window_params = [{transform_indices = @transform_0, window_bounds = array<i64: 8, 128>}, {pipeline_mode = #tpu.pipeline_mode<synchronous>, transform_indices = @transform_1, window_bounds = array<i64: 1, 128>}, {pipeline_mode = #tpu.pipeline_mode<synchronous>, transform_indices = @transform_2, window_bounds = array<i64: 1, 128>}, {pipeline_mode = #tpu.pipeline_mode<synchronous>, transform_indices = @transform_3, window_bounds = array<i64: 128, 128>}, {pipeline_mode = #tpu.pipeline_mode<synchronous>, transform_indices = @transform_4, window_bounds = array<i64: 1, 128>}, {pipeline_mode = #tpu.pipeline_mode<synchronous>, transform_indices = @transform_5, window_bounds = array<i64: 128, 128>}, {pipeline_mode = #tpu.pipeline_mode<synchronous>, transform_indices = @transform_6, window_bounds = array<i64: 1, 128>}, {pipeline_mode = #tpu.pipeline_mode<synchronous>, transform_indices = @transform_7, window_bounds = array<i64: 128, 128>}, {pipeline_mode = #tpu.pipeline_mode<synchronous>, transform_indices = @transform_8, window_bounds = array<i64: 1, 128>}, {transform_indices = @transform_9, window_bounds = array<i64: 8, 128>}]} {
    %c0 = arith.constant 0 : index
    %c0_0 = arith.constant 0 : index
    %0 = vector.load %arg1[%c0, %c0_0] : memref<8x128xf32, #tpu.memory_space<vmem>>, vector<8x128xf32>
    %c0_1 = arith.constant 0 : index
    %c0_2 = arith.constant 0 : index
    %1 = vector.load %arg2[%c0_1, %c0_2] : memref<1x128xf32, #tpu.memory_space<vmem>>, vector<1x128xf32>
    %2 = vector.broadcast %1 : vector<1x128xf32> to vector<8x128xf32>
    %3 = arith.mulf %0, %2 : vector<8x128xf32>
    %c0_3 = arith.constant 0 : index
    %c0_4 = arith.constant 0 : index
    %4 = vector.load %arg3[%c0_3, %c0_4] : memref<1x128xf32, #tpu.memory_space<vmem>>, vector<1x128xf32>
    %5 = vector.broadcast %4 : vector<1x128xf32> to vector<8x128xf32>
    %6 = arith.addf %3, %5 : vector<8x128xf32>
    %7 = arith.truncf %6 : vector<8x128xf32> to vector<8x128xbf16>
    %c0_5 = arith.constant 0 : index
    %c0_6 = arith.constant 0 : index
    %8 = vector.load %arg4[%c0_5, %c0_6] : memref<128x128xbf16, #tpu.memory_space<vmem>>, vector<128x128xbf16>
    %cst = arith.constant dense<0.000000e+00> : vector<8x128xf32>
    %9 = tpu.matmul %7, %8, %cst {dimension_numbers = #tpu.dot_dimension_numbers<[1], [0], [0], [1], [0, 0, 1, 1], [], []>} : vector<8x128xbf16>, vector<128x128xbf16>, vector<8x128xf32> -> vector<8x128xf32>
    %c0_7 = arith.constant 0 : index
    %c0_8 = arith.constant 0 : index
    %10 = vector.load %arg5[%c0_7, %c0_8] : memref<1x128xf32, #tpu.memory_space<vmem>>, vector<1x128xf32>
    %11 = vector.broadcast %10 : vector<1x128xf32> to vector<8x128xf32>
    %12 = arith.addf %9, %11 : vector<8x128xf32>
    %cst_9 = arith.constant 0.000000e+00 : f32
    %13 = vector.broadcast %cst_9 : f32 to vector<8x128xf32>
    %14 = arith.maximumf %12, %13 : vector<8x128xf32>
    %15 = arith.truncf %14 : vector<8x128xf32> to vector<8x128xbf16>
    %c0_10 = arith.constant 0 : index
    %c0_11 = arith.constant 0 : index
    %16 = vector.load %arg6[%c0_10, %c0_11] : memref<128x128xbf16, #tpu.memory_space<vmem>>, vector<128x128xbf16>
    %cst_12 = arith.constant dense<0.000000e+00> : vector<8x128xf32>
    %17 = tpu.matmul %15, %16, %cst_12 {dimension_numbers = #tpu.dot_dimension_numbers<[1], [0], [0], [1], [0, 0, 1, 1], [], []>} : vector<8x128xbf16>, vector<128x128xbf16>, vector<8x128xf32> -> vector<8x128xf32>
    %c0_13 = arith.constant 0 : index
    %c0_14 = arith.constant 0 : index
    %18 = vector.load %arg7[%c0_13, %c0_14] : memref<1x128xf32, #tpu.memory_space<vmem>>, vector<1x128xf32>
    %19 = vector.broadcast %18 : vector<1x128xf32> to vector<8x128xf32>
    %20 = arith.addf %17, %19 : vector<8x128xf32>
    %cst_15 = arith.constant 0.000000e+00 : f32
    %21 = vector.broadcast %cst_15 : f32 to vector<8x128xf32>
    %22 = arith.maximumf %20, %21 : vector<8x128xf32>
    %23 = arith.truncf %22 : vector<8x128xf32> to vector<8x128xbf16>
    %c0_16 = arith.constant 0 : index
    %c0_17 = arith.constant 0 : index
    %24 = vector.load %arg8[%c0_16, %c0_17] : memref<128x128xbf16, #tpu.memory_space<vmem>>, vector<128x128xbf16>
    %cst_18 = arith.constant dense<0.000000e+00> : vector<8x128xf32>
    %25 = tpu.matmul %23, %24, %cst_18 {dimension_numbers = #tpu.dot_dimension_numbers<[1], [0], [0], [1], [0, 0, 1, 1], [], []>} : vector<8x128xbf16>, vector<128x128xbf16>, vector<8x128xf32> -> vector<8x128xf32>
    %c0_19 = arith.constant 0 : index
    %c0_20 = arith.constant 0 : index
    %26 = vector.load %arg9[%c0_19, %c0_20] : memref<1x128xf32, #tpu.memory_space<vmem>>, vector<1x128xf32>
    %27 = vector.broadcast %26 : vector<1x128xf32> to vector<8x128xf32>
    %28 = arith.addf %25, %27 : vector<8x128xf32>
    %cst_21 = arith.constant 0.000000e+00 : f32
    %29 = vector.broadcast %cst_21 : f32 to vector<8x128xf32>
    %30 = arith.maximumf %28, %29 : vector<8x128xf32>
    %c0_22 = arith.constant 0 : index
    %c0_23 = arith.constant 0 : index
    %31 = vector.load %arg10[%c0_22, %c0_23] : memref<8x128xf32, #tpu.memory_space<vmem>>, vector<8x128xf32>
    tpu.vector_store %arg10[%c0_22, %c0_23], %30 {strides = array<i32>} : memref<8x128xf32, #tpu.memory_space<vmem>>, vector<8x128xf32>,
    return
  }
  func.func @transform_0(%arg0: i32) -> (i32, i32) {
    %c0_i32 = arith.constant 0 : i32
    %c0_i32_0 = arith.constant 0 : i32
    return %arg0, %c0_i32 : i32, i32
  }
  func.func @transform_1(%arg0: i32) -> (i32, i32) {
    %c0_i32 = arith.constant 0 : i32
    %c0_i32_0 = arith.constant 0 : i32
    %c0_i32_1 = arith.constant 0 : i32
    return %c0_i32, %c0_i32_0 : i32, i32
  }
  func.func @transform_2(%arg0: i32) -> (i32, i32) {
    %c0_i32 = arith.constant 0 : i32
    %c0_i32_0 = arith.constant 0 : i32
    %c0_i32_1 = arith.constant 0 : i32
    return %c0_i32, %c0_i32_0 : i32, i32
  }
  func.func @transform_3(%arg0: i32) -> (i32, i32) {
    %c0_i32 = arith.constant 0 : i32
    %c0_i32_0 = arith.constant 0 : i32
    %c0_i32_1 = arith.constant 0 : i32
    return %c0_i32, %c0_i32_0 : i32, i32
  }
  func.func @transform_4(%arg0: i32) -> (i32, i32) {
    %c0_i32 = arith.constant 0 : i32
    %c0_i32_0 = arith.constant 0 : i32
    %c0_i32_1 = arith.constant 0 : i32
    return %c0_i32, %c0_i32_0 : i32, i32
  }
  func.func @transform_5(%arg0: i32) -> (i32, i32) {
    %c0_i32 = arith.constant 0 : i32
    %c0_i32_0 = arith.constant 0 : i32
    %c0_i32_1 = arith.constant 0 : i32
    return %c0_i32, %c0_i32_0 : i32, i32
  }
  func.func @transform_6(%arg0: i32) -> (i32, i32) {
    %c0_i32 = arith.constant 0 : i32
    %c0_i32_0 = arith.constant 0 : i32
    %c0_i32_1 = arith.constant 0 : i32
    return %c0_i32, %c0_i32_0 : i32, i32
  }
  func.func @transform_7(%arg0: i32) -> (i32, i32) {
    %c0_i32 = arith.constant 0 : i32
    %c0_i32_0 = arith.constant 0 : i32
    %c0_i32_1 = arith.constant 0 : i32
    return %c0_i32, %c0_i32_0 : i32, i32
  }
  func.func @transform_8(%arg0: i32) -> (i32, i32) {
    %c0_i32 = arith.constant 0 : i32
    %c0_i32_0 = arith.constant 0 : i32
    %c0_i32_1 = arith.constant 0 : i32
    return %c0_i32, %c0_i32_0 : i32, i32
  }
  func.func @transform_9(%arg0: i32) -> (i32, i32) {
    %c0_i32 = arith.constant 0 : i32
    %c0_i32_0 = arith.constant 0 : i32
    return %arg0, %c0_i32 : i32, i32
  }
}

</mosaic_0001>

<bundles_post_ra>
// kernel: tpu_custom_call.1
= control target key start
LH: loop header
LB: loop body
LE: loop exit
PB: predicated region body
PF: predicated region fallthrough
CT: control target
= control target key end

     0   :  { %14 = vsyncpa [#allocation3], 0  ;;  %s901_s0 = inlined_call_operand.hbm [shape: f32[8,128], index: 0, kind: input, shape index: {}]   ;;  %s902_s1 = inlined_call_operand.vmem [shape: f32[1,128], index: 1, kind: input, shape index: {}]   ;;  %s903_s2 = inlined_call_operand.vmem [shape: f32[1,128], index: 2, kind: input, shape index: {}]   ;;  %s904_s3 = inlined_call_operand.hbm [shape: bf16[128,128], index: 3, kind: input, shape index: {}]   ;;  %s905_s4 = inlined_call_operand.vmem [shape: f32[1,128], index: 4, kind: input, shape index: {}]   ;;  %s906_s5 = inlined_call_operand.hbm [shape: bf16[128,128], index: 5, kind: input, shape index: {}]   ;;  %s907_s6 = inlined_call_operand.vmem [shape: f32[1,128], index: 6, kind: input, shape index: {}]   ;;  %s908_s7 = inlined_call_operand.hbm [shape: bf16[128,128], index: 7, kind: input, shape index: {}]   ;;  %s909_s8 = inlined_call_operand.vmem [shape: f32[1,128], index: 8, kind: input, shape index: {}]   ;;  %s910_s9 = inlined_call_operand.hbm [shape: f32[8,128], index: 9, kind: output, shape index: {}]  }
   0x1   :  { %15 = vsyncpa [#allocation6], 0 }
   0x2   :  { %16 = vsyncpa [#allocation9], 0 }
   0x3   :  { %17 = vsyncpa [#allocation4], 0  ;;  %s728_s30 = smov [#allocation5]   ;;  %s610_s13 = scalar_lea.hbm %s904_s3, 1024 }
   0x4   :  { %s37_s10 = sshll.u32 %s728_s30, 4  ;;  %p611_p0 = scmp.ne.s32.totalorder %s904_s3, %s610_s13  ;;  %s38_s10 = int_to_ptr.vmem [resolvable:$true] %s37_s10 }
   0x5   :  { %p614_p1 = scmp.lt.u32.totalorder %s610_s13, %s904_s3 }
   0x7   :  { %p616_p2 = pnand %p614_p1, %p611_p0 }
   0x9   :  { %619 = shalt.err (!%p616_p2)
}
   0xa   :  { %s620_s18 = scalar_lea.vmem %s38_s10, 1024  ;;  %p625_p4 = scmp.lt.s32.totalorder %s38_s10, %s38_s10 }
   0xb   :  { %p621_p3 = scmp.ne.s32.totalorder %s38_s10, %s620_s18  ;;  %p626_p5 = scmp.lt.s32.totalorder %s620_s18, %s620_s18 }
   0xd   :  { %p627_p6 = por %p626_p5, %p625_p4 }
   0xf   :  { %p628_p7 = pnand %p627_p6, %p621_p3 }
  0x11   :  { %631 = shalt.err (!%p628_p7)
}
  0x12   :  { %s729_s19 = smov 64   ;;  %s730_s20 = smov 4  }
  0x13   :  { %43 = dma.hbm_to_vmem [thread:$0]  %s904_s3, 1024, %s38_s10, [#allocation6], %s729_s19, %s729_s19, %s730_s20  }
  0x14   :  { %s731_s23 = smov [#allocation2]   ;;  %s732_s25 = smov [#allocation7]  }
  0x15   :  { %s24_s24 = sshll.u32 %s731_s23, 4  ;;  %s51_s26 = sshll.u32 %s732_s25, 4  ;;  %s25_s24 = int_to_ptr.vmem [resolvable:$true] %s24_s24  ;;  %s52_s26 = int_to_ptr.vmem [resolvable:$true] %s51_s26 }
  0x16   :  { %s632_s29 = scalar_lea.hbm %s901_s0, 128 }
  0x17   :  { %p633_p8 = scmp.ne.s32.totalorder %s901_s0, %s632_s29  ;;  %p636_p9 = scmp.lt.u32.totalorder %s632_s29, %s901_s0 }
  0x19   :  { %p638_p10 = pnand %p636_p9, %p633_p8 }
  0x1b   :  { %641 = shalt.err (!%p638_p10)
}
  0x1c   :  { %s642_s3 = scalar_lea.vmem %s25_s24, 128  ;;  %p647_p12 = scmp.lt.s32.totalorder %s25_s24, %s25_s24 }
  0x1d   :  { %p643_p11 = scmp.ne.s32.totalorder %s25_s24, %s642_s3  ;;  %p648_p13 = scmp.lt.s32.totalorder %s642_s3, %s642_s3 }
  0x1f   :  { %p649_p0 = por %p648_p13, %p647_p12 }
  0x21   :  { %p650_p1 = pnand %p649_p0, %p643_p11 }
  0x23   :  { %653 = shalt.err (!%p650_p1)
}
  0x24   :  { %27 = dma.hbm_to_vmem [thread:$0]  %s901_s0, 128, %s25_s24, [#allocation3]  }
  0x25   :  { %s654_s17 = scalar_lea.hbm %s906_s5, 1024 }
  0x26   :  { %p655_p2 = scmp.ne.s32.totalorder %s906_s5, %s654_s17  ;;  %p658_p3 = scmp.lt.u32.totalorder %s654_s17, %s906_s5 }
  0x28   :  { %p660_p4 = pnand %p658_p3, %p655_p2 }
  0x2a   :  { %663 = shalt.err (!%p660_p4)
}
  0x2b   :  { %s664_s25 = scalar_lea.vmem %s52_s26, 1024  ;;  %p669_p6 = scmp.lt.s32.totalorder %s52_s26, %s52_s26 }
  0x2c   :  { %p665_p5 = scmp.ne.s32.totalorder %s52_s26, %s664_s25  ;;  %p670_p7 = scmp.lt.s32.totalorder %s664_s25, %s664_s25 }
  0x2e   :  { %p671_p8 = por %p670_p7, %p669_p6 }
  0x30   :  { %p672_p9 = pnand %p671_p8, %p665_p5 }
  0x32   :  { %675 = shalt.err (!%p672_p9)
}
  0x33   :  { %57 = dma.hbm_to_vmem [thread:$0]  %s906_s5, 1024, %s52_s26, [#allocation6], %s729_s19, %s729_s19, %s730_s20  }
  0x34   :  { %s733_s27 = smov [#allocation8]   ;;  %s676_s11 = scalar_lea.hbm %s908_s7, 1024 }
  0x35   :  { %s65_s28 = sshll.u32 %s733_s27, 4  ;;  %p677_p10 = scmp.ne.s32.totalorder %s908_s7, %s676_s11  ;;  %s66_s28 = int_to_ptr.vmem [resolvable:$true] %s65_s28 }
  0x36   :  { %p680_p11 = scmp.lt.u32.totalorder %s676_s11, %s908_s7 }
  0x38   :  { %p682_p12 = pnand %p680_p11, %p677_p10 }
  0x3a   :  { %685 = shalt.err (!%p682_p12)
}
  0x3b   :  { %s686_s14 = scalar_lea.vmem %s66_s28, 1024  ;;  %p691_p0 = scmp.lt.s32.totalorder %s66_s28, %s66_s28 }
  0x3c   :  { %p687_p13 = scmp.ne.s32.totalorder %s66_s28, %s686_s14  ;;  %p692_p1 = scmp.lt.s32.totalorder %s686_s14, %s686_s14 }
  0x3e   :  { %p693_p2 = por %p692_p1, %p691_p0 }
  0x40   :  { %p694_p3 = pnand %p693_p2, %p687_p13 }
  0x42   :  { %697 = shalt.err (!%p694_p3)
}
  0x43   :  { %71 = dma.hbm_to_vmem [thread:$0]  %s908_s7, 1024, %s66_s28, [#allocation9], %s729_s19, %s729_s19, %s730_s20  }
  0x44   :  { %720 = dma.done.wait [#allocation3], 128  }
  0x45   :  { %721 = vsyncadd [#allocation3], 4294967168 }
  0x46   :  { %722 = dma.done.wait [#allocation6], 2048  }
  0x47   :  { %723 = vsyncadd [#allocation6], 4294965248 }
  0x48   :  { %724 = dma.done.wait [#allocation9], 1024  }
  0x49   :  { %725 = vsyncadd [#allocation9], 4294966272  ;;  %v734_v0 = vmov 0.0   ;;  %vm735_vm0 = vmmov 0   ;;  %v586_v1 = vld [vmem:[#allocation5] sm:$0xff]   ;;  %v587_v2 = vld [vmem:[#allocation5 + $0x8] sm:$0xff]  }
  0x4a   :  { %517 = vmatprep.subr.bf16.mxu0 %v734_v0  ;;  %533 = vmatprep.mubr.msk.bf16.mxu0 %vm735_vm0, %v734_v0  ;;  %v588_v3 = vld [vmem:[#allocation5 + $0x10] sm:$0xff]   ;;  %v594_v4 = vld [vmem:[#allocation7] sm:$0xff]   ;;  %v589_v5 = vld [vmem:[#allocation5 + $0x18] sm:$0xff]   ;;  %s736_s21 = smov [#allocation10]  }
  0x4b   :  { %537 = vmatprep.subr.bf16.mxu1 %v734_v0  ;;  %553 = vmatprep.mubr.msk.bf16.mxu1 %vm735_vm0, %v734_v0  ;;  %v595_v6 = vld [vmem:[#allocation7 + $0x8] sm:$0xff]   ;;  %v590_v7 = vld [vmem:[#allocation5 + $0x20] sm:$0xff]   ;;  %v596_v8 = vld [vmem:[#allocation7 + $0x10] sm:$0xff]   ;;  %s450_s22 = sshll.u32 %s736_s21, 4  ;;  %s451_s22 = int_to_ptr.vmem [resolvable:$true] %s450_s22 }
  0x4c   :  { %518 = vmatpush3.bf16.msra.mxu0 %v586_v1  ;;  %538 = vmatpush3.bf16.msra.mxu1 %v594_v4  ;;  %v591_v9 = vld [vmem:[#allocation5 + $0x28] sm:$0xff]   ;;  %v87_v10 = vld [vmem:[#allocation2] sm:$0xff]  ;;  %v592_v14 = vld [vmem:[#allocation5 + $0x30] sm:$0xff]   ;;  %p703_p5 = scmp.lt.s32.totalorder %s451_s22, %s451_s22 }
  0x4d   :  { %519 = vmatprep.subr.bf16.mxu0 %v734_v0  ;;  %539 = vmatprep.subr.bf16.mxu1 %v734_v0  ;;  %v461_v11 = vld [vmem:[%s902_s1] ss:$0 sm:$0xff]  ;;  %v598_v16 = vld [vmem:[#allocation7 + $0x20] sm:$0xff]   ;;  %v599_v19 = vld [vmem:[#allocation7 + $0x28] sm:$0xff]  }
  0x4e   :  { %v597_v12 = vld [vmem:[#allocation7 + $0x18] sm:$0xff]   ;;  %v95_v13 = vmul.f32 %v461_v11, %v87_v10  ;;  %v600_v21 = vld [vmem:[#allocation7 + $0x30] sm:$0xff]   ;;  %v602_v23 = vld [vmem:[#allocation8] sm:$0xff]  }
  0x4f   :  { %v462_v15 = vld [vmem:[%s903_s2] ss:$0 sm:$0xff]  ;;  %v603_v24 = vld [vmem:[#allocation8 + $0x8] sm:$0xff]   ;;  %v604_v25 = vld [vmem:[#allocation8 + $0x10] sm:$0xff]  }
  0x50   :  { %520 = vmatpush3.bf16.msra.mxu0 %v587_v2  ;;  %540 = vmatpush3.bf16.msra.mxu1 %v595_v6  ;;  %v103_v17 = vadd.f32 %v462_v15, %v95_v13  ;;  %v593_v18 = vld [vmem:[#allocation5 + $0x38] sm:$0xff]   ;;  %v606_v27 = vld [vmem:[#allocation8 + $0x20] sm:$0xff]   ;;  %v607_v28 = vld [vmem:[#allocation8 + $0x28] sm:$0xff]  }
  0x51   :  { %521 = vmatprep.subr.bf16.mxu0 %v734_v0  ;;  %541 = vmatprep.subr.bf16.mxu1 %v734_v0  ;;  %v601_v22 = vld [vmem:[#allocation7 + $0x38] sm:$0xff]   ;;  %v608_v37 = vld [vmem:[#allocation8 + $0x30] sm:$0xff]  }
  0x52   :  { %v104_v20 = vpack.c.bf16 %v103_v17, %v103_v17  ;;  %v605_v26 = vld [vmem:[#allocation8 + $0x18] sm:$0xff]  }
  0x53   :  { %v463_v29 = vld [vmem:[%s905_s4] ss:$0 sm:$0xff] }
  0x54   :  { %522 = vmatpush3.bf16.msra.mxu0 %v588_v3  ;;  %542 = vmatpush3.bf16.msra.mxu1 %v596_v8  ;;  %v609_v38 = vld [vmem:[#allocation8 + $0x38] sm:$0xff]  }
  0x55   :  { %523 = vmatprep.subr.bf16.mxu0 %v734_v0  ;;  %543 = vmatprep.subr.bf16.mxu1 %v734_v0  ;;  %v472_v39 = vld [vmem:[%s907_s6] ss:$0 sm:$0xff]  ;;  %s698_s6 = scalar_lea.vmem %s451_s22, 128 }
  0x56   :  { %v481_v47 = vld [vmem:[%s909_s8] ss:$0 sm:$0xff]  ;;  %p699_p4 = scmp.ne.s32.totalorder %s451_s22, %s698_s6  ;;  %p704_p6 = scmp.lt.s32.totalorder %s698_s6, %s698_s6 }
  0x58   :  { %524 = vmatpush3.bf16.msra.mxu0 %v589_v5  ;;  %544 = vmatpush3.bf16.msra.mxu1 %v597_v12  ;;  %p705_p7 = por %p704_p6, %p703_p5 }
  0x59   :  { %525 = vmatprep.subr.bf16.mxu0 %v734_v0  ;;  %545 = vmatprep.subr.bf16.mxu1 %v734_v0 }
  0x5a   :  { %p706_p8 = pnand %p705_p7, %p699_p4 }
  0x5c   :  { %526 = vmatpush3.bf16.msra.mxu0 %v590_v7  ;;  %546 = vmatpush3.bf16.msra.mxu1 %v598_v16 }
  0x5d   :  { %527 = vmatprep.subr.bf16.mxu0 %v734_v0  ;;  %547 = vmatprep.subr.bf16.mxu1 %v734_v0 }
  0x60   :  { %528 = vmatpush3.bf16.msra.mxu0 %v591_v9  ;;  %548 = vmatpush3.bf16.msra.mxu1 %v599_v19 }
  0x61   :  { %529 = vmatprep.subr.bf16.mxu0 %v734_v0  ;;  %549 = vmatprep.subr.bf16.mxu1 %v734_v0 }
  0x64   :  { %530 = vmatpush3.bf16.msra.mxu0 %v592_v14  ;;  %550 = vmatpush3.bf16.msra.mxu1 %v600_v21 }
  0x65   :  { %531 = vmatprep.subr.bf16.mxu0 %v734_v0  ;;  %551 = vmatprep.subr.bf16.mxu1 %v734_v0 }
  0x68   :  { %532 = vmatpush3.bf16.msra.mxu0 %v593_v18  ;;  %552 = vmatpush3.bf16.msra.mxu1 %v601_v22 }
  0x69   :  { %557 = vmatprep.subr.bf16.mxu0 %v734_v0 }
  0x6b   :  { %534 = vmatmul.mubr.bf16.vlgmr.msra.gmra.mrb[0].mxu0 %v104_v20 }
  0x6c   :  { %573 = vmatprep.mubr.msk.bf16.mxu0 %vm735_vm0, %v734_v0  ;;  %558 = vmatpush3.bf16.msra.mxu0 %v602_v23 }
  0x6d   :  { %559 = vmatprep.subr.bf16.mxu0 %v734_v0 }
  0x70   :  { %560 = vmatpush3.bf16.msra.mxu0 %v603_v24 }
  0x71   :  { %561 = vmatprep.subr.bf16.mxu0 %v734_v0 }
  0x74   :  { %562 = vmatpush3.bf16.msra.mxu0 %v604_v25 }
  0x75   :  { %563 = vmatprep.subr.bf16.mxu0 %v734_v0 }
  0x78   :  { %564 = vmatpush3.bf16.msra.mxu0 %v605_v26 }
  0x79   :  { %565 = vmatprep.subr.bf16.mxu0 %v734_v0 }
  0x7c   :  { %566 = vmatpush3.bf16.msra.mxu0 %v606_v27 }
  0x7d   :  { %567 = vmatprep.subr.bf16.mxu0 %v734_v0 }
  0x80   :  { %568 = vmatpush3.bf16.msra.mxu0 %v607_v28 }
  0x81   :  { %569 = vmatprep.subr.bf16.mxu0 %v734_v0 }
  0x84   :  { %570 = vmatpush3.bf16.msra.mxu0 %v608_v37 }
  0x85   :  { %571 = vmatprep.subr.bf16.mxu0 %v734_v0 }
  0x88   :  { %572 = vmatpush3.bf16.msra.mxu0 %v609_v38 }
 0x13e   :  { %v210_v30 = vpop.f32.mrb[0].mxu0 }
 0x13f   :  { %v211_v31 = vadd.f32 %v463_v29, %v210_v30  ;;  %v535_v32 = vpop.f32.mrb[1].mxu0 }
 0x140   :  { %v213_v33 = vpop.f32.mrb[2].mxu0 }
 0x141   :  { %v216_v34 = vmax.f32 %v211_v31, 0.0  ;;  %v536_v35 = vpop.f32.mrb[3].mxu0 }
 0x143   :  { %v217_v36 = vpack.c.bf16 %v216_v34, %v216_v34 }
 0x145   :  { %554 = vmatmul.mubr.bf16.vlgmr.msra.gmra.mrb[0].mxu1 %v217_v36 }
 0x218   :  { %v323_v40 = vpop.f32.mrb[0].mxu1 }
 0x219   :  { %v324_v41 = vadd.f32 %v472_v39, %v323_v40  ;;  %v555_v42 = vpop.f32.mrb[1].mxu1 }
 0x21a   :  { %v326_v43 = vpop.f32.mrb[2].mxu1 }
 0x21b   :  { %v329_v44 = vmax.f32 %v324_v41, 0.0  ;;  %v556_v45 = vpop.f32.mrb[3].mxu1 }
 0x21d   :  { %v330_v46 = vpack.c.bf16 %v329_v44, %v329_v44 }
 0x21f   :  { %574 = vmatmul.mubr.bf16.vlgmr.msra.gmra.mrb[4].mxu0 %v330_v46 }
 0x2f2   :  { %v436_v48 = vpop.f32.mrb[4].mxu0 }
 0x2f3   :  { %v437_v49 = vadd.f32 %v481_v47, %v436_v48  ;;  %v575_v50 = vpop.f32.mrb[5].mxu0 }
 0x2f4   :  { %v439_v51 = vpop.f32.mrb[6].mxu0 }
 0x2f5   :  { %v442_v52 = vmax.f32 %v437_v49, 0.0  ;;  %v576_v53 = vpop.f32.mrb[7].mxu0 }
 0x2f7   :  { %443 = vst [vmem:[#allocation10] sm:$0xff] %v442_v52 }
 0x2f8   :  { %709 = shalt.err (!%p706_p8)
}
 0x2f9   :  { %s710_s8 = scalar_lea.hbm %s910_s9, 128 }
 0x2fa   :  { %p711_p9 = scmp.ne.s32.totalorder %s910_s9, %s710_s8  ;;  %p714_p10 = scmp.lt.u32.totalorder %s710_s8, %s910_s9 }
 0x2fc   :  { %p716_p11 = pnand %p714_p10, %p711_p9 }
 0x2fe   :  { %719 = shalt.err (!%p716_p11)
}
 0x2ff   :  { %453 = dma.vmem_to_hbm [thread:$0]  %s451_s22, 128, %s910_s9, [#allocation4]  }
 0x300   :  { %726 = dma.done.wait [#allocation4], 128  }
 0x301   :  { %727 = vsyncadd [#allocation4], 4294967168 }
 0x302   :  { %457 = vsyncpa [#allocation3], 1 }
 0x303   :  { %458 = vsyncpa [#allocation6], 1 }
 0x304   :  { %459 = vsyncpa [#allocation9], 1 }
 0x305   :  { %460 = vsyncpa [#allocation4], 1 }

</bundles_post_ra>
